<compile_context>
chip_gen: v5e
topology: v5e:2x2
jax: 0.10.0
libtpu: 0.0.40
codegen_flags: <defaults>
</compile_context>

<pallas_src>
import functools

import jax
import jax.numpy as jnp
from jax.experimental import pallas as pl
from jax.experimental.pallas import tpu as pltpu


_VMEM_LIMIT = 48 * 1024 * 1024  # leave headroom on v7x (64 MiB physical)


# ----------------------------------------------------------------------------
# Linear projection: tiled over rows, pipelined.
# ----------------------------------------------------------------------------
def _linear_kernel(x_ref, w_ref, o_ref):
    # x_ref: (tm, K), w_ref: (K, N) -> o_ref: (tm, N)
    o_ref[...] = jnp.dot(
        x_ref[...], w_ref[...], preferred_element_type=jnp.float32
    ).astype(o_ref.dtype)


def _linear(x, w, *, tm_max=256):
    """x @ w with w already in (in_features, out_features) layout."""
    M, K = x.shape
    K2, N = w.shape
    assert K == K2
    tm = min(tm_max, M)
    grid = (pl.cdiv(M, tm),)
    return pl.pallas_call(
        _linear_kernel,
        out_shape=jax.ShapeDtypeStruct((M, N), x.dtype),
        grid=grid,
        in_specs=[
            pl.BlockSpec((tm, K), lambda i: (i, 0)),
            pl.BlockSpec((K, N), lambda i: (0, 0)),
        ],
        out_specs=pl.BlockSpec((tm, N), lambda i: (i, 0)),
        compiler_params=pltpu.CompilerParams(
            dimension_semantics=("parallel",),
            vmem_limit_bytes=_VMEM_LIMIT,
        ),
    )(x, w)


# ----------------------------------------------------------------------------
# Flash-style attention: grid = (B, Nq tiles, Nk tiles), online softmax.
# ----------------------------------------------------------------------------
def _attn_kernel(q_ref, k_ref, v_ref, o_ref, m_sc, l_sc, acc_sc, *, scale):
    # refs are (H, tq, Dh) / (H, tk, Dh) for one batch element
    ki = pl.program_id(2)

    @pl.when(ki == 0)
    def _():
        m_sc[...] = jnp.full_like(m_sc, -jnp.inf)
        l_sc[...] = jnp.zeros_like(l_sc)
        acc_sc[...] = jnp.zeros_like(acc_sc)

    # fold softmax scale into q (H*tq*Dh multiplies, not H*tq*tk)
    q = q_ref[...] * scale
    k = k_ref[...]
    v = v_ref[...]

    # batched QK^T contracting the last axes -- no explicit transpose of k
    s = jnp.einsum("hqd,hkd->hqk", q, k, preferred_element_type=jnp.float32)

    m_prev = m_sc[...]
    m_new = jnp.maximum(m_prev, jnp.max(s, axis=-1, keepdims=True))
    alpha = jnp.exp(m_prev - m_new)
    p = jnp.exp(s - m_new)

    l_sc[...] = alpha * l_sc[...] + jnp.sum(p, axis=-1, keepdims=True)
    acc_sc[...] = alpha * acc_sc[...] + jnp.einsum(
        "hqk,hkd->hqd", p.astype(v.dtype), v, preferred_element_type=jnp.float32
    )
    m_sc[...] = m_new

    @pl.when(ki == pl.num_programs(2) - 1)
    def _():
        # normalize after the PV matmul (N*Dh multiplies), approx recip -> EUP
        inv = pl.reciprocal(l_sc[...], approx=True)
        o_ref[...] = (acc_sc[...] * inv).astype(o_ref.dtype)


def _pick_tile(n, cap):
    """Largest multiple-of-8 divisor of n that is <= cap (or n itself)."""
    if n <= cap:
        return n
    for t in range(cap, 7, -8):
        if n % t == 0:
            return t
    return n


def _attention_core(q, k, v, scale, *, tq_max=256, tk_max=512):
    """q, k, v: (B, H, N, Dh) -> (B, H, N, Dh)."""
    B, H, N, Dh = q.shape
    tq = _pick_tile(N, tq_max)
    tk = _pick_tile(N, tk_max)
    grid = (B, N // tq, N // tk)

    q_spec = pl.BlockSpec((None, H, tq, Dh), lambda b, qi, ki: (b, 0, qi, 0))
    kv_spec = pl.BlockSpec((None, H, tk, Dh), lambda b, qi, ki: (b, 0, ki, 0))
    o_spec = pl.BlockSpec((None, H, tq, Dh), lambda b, qi, ki: (b, 0, qi, 0))

    return pl.pallas_call(
        functools.partial(_attn_kernel, scale=scale),
        out_shape=jax.ShapeDtypeStruct((B, H, N, Dh), q.dtype),
        grid=grid,
        in_specs=[q_spec, kv_spec, kv_spec],
        out_specs=o_spec,
        scratch_shapes=[
            pltpu.VMEM((H, tq, 1), jnp.float32),   # running max m
            pltpu.VMEM((H, tq, 1), jnp.float32),   # running denom l
            pltpu.VMEM((H, tq, Dh), jnp.float32),  # running accumulator
        ],
        compiler_params=pltpu.CompilerParams(
            dimension_semantics=("parallel", "parallel", "arbitrary"),
            vmem_limit_bytes=_VMEM_LIMIT,
        ),
    )(q, k, v)


# ----------------------------------------------------------------------------
# Forward pass of `Attention`
# ----------------------------------------------------------------------------
@functools.partial(jax.jit, static_argnames=("heads", "dim_head"))
def attention_forward(x, w_qkv_t, w_out_t, *, heads, dim_head):
    """
    x       : (B, N, dim)
    w_qkv_t : (dim, 3*inner)   -- pre-transposed to (in, out) once at init
    w_out_t : (inner, dim)     -- pre-transposed to (in, out) once at init
    """
    B, N, dim = x.shape
    inner = heads * dim_head
    scale = dim_head ** (-0.5)

    # to_qkv : Linear(dim, 3*inner, bias=False)
    qkv = _linear(x.reshape(B * N, dim), w_qkv_t)                 # (B*N, 3*inner)
    qkv = qkv.reshape(B, N, 3, heads, dim_head).transpose(2, 0, 3, 1, 4)
    q, k, v = qkv[0], qkv[1], qkv[2]                              # (B, H, N, Dh)

    out = _attention_core(q, k, v, scale)                         # (B, H, N, Dh)

    # 'b h n d -> b n (h d)'
    out = out.transpose(0, 2, 1, 3).reshape(B * N, inner)

    # to_out : Linear(inner, dim) + Dropout(0.0) == identity at inference
    return _linear(out, w_out_t).reshape(B, N, dim)


# pure-JAX reference (PyTorch-layout weights) for a sanity check
def _reference(x, w_qkv, w_out, *, heads, dim_head):
    B, N, dim = x.shape
    inner = heads * dim_head
    scale = dim_head ** (-0.5)
    qkv = x @ w_qkv.T
    q, k, v = jnp.split(qkv, 3, axis=-1)
    rearr = lambda t: t.reshape(B, N, heads, dim_head).transpose(0, 2, 1, 3)
    q, k, v = map(rearr, (q, k, v))
    dots = jnp.einsum("bhid,bhjd->bhij", q, k) * scale
    attn = jax.nn.softmax(dots, axis=-1)
    o = jnp.einsum("bhij,bhjd->bhid", attn, v)
    o = o.transpose(0, 2, 1, 3).reshape(B, N, inner)
    return o @ w_out.T


# ----------------------------------------------------------------------------
if __name__ == "__main__":
    # small shapes consistent with the module
    B, N, dim = 2, 8, 32
    heads, dim_head = 4, 16
    inner = heads * dim_head

    key = jax.random.PRNGKey(0)
    kx, kqkv, kout = jax.random.split(key, 3)

    x = jax.random.normal(kx, (B, N, dim), dtype=jnp.float32)
    # PyTorch Linear weight layout: (out_features, in_features)
    w_qkv = jax.random.normal(kqkv, (3 * inner, dim), dtype=jnp.float32) * 0.05
    w_out = jax.random.normal(kout, (dim, inner), dtype=jnp.float32) * 0.05

    # pre-transpose weights ONCE (hoisted out of the forward path)
    w_qkv_t = jnp.asarray(w_qkv.T)
    w_out_t = jnp.asarray(w_out.T)

    y = attention_forward(x, w_qkv_t, w_out_t, heads=heads, dim_head=dim_head)
    y = jax.block_until_ready(y)

    y_ref = _reference(x, w_qkv, w_out, heads=heads, dim_head=dim_head)
    assert y.shape == (B, N, dim)
    assert jnp.allclose(y, y_ref, atol=5e-3, rtol=5e-3), "mismatch vs reference"

    print("KERNEL_OK")
</pallas_src>

<mosaic_0001>
module attributes {stable_mosaic.version = 11 : i64} {
  func.func @_attn_kernel(%arg0: i32, %arg1: i32, %arg2: i32, %arg3: memref<1x4x8x16xf32, #tpu.memory_space<vmem>>, %arg4: memref<1x4x8x16xf32, #tpu.memory_space<vmem>>, %arg5: memref<1x4x8x16xf32, #tpu.memory_space<vmem>>, %arg6: memref<1x4x8x16xf32, #tpu.memory_space<vmem>>, %arg7: memref<4x8x1xf32, #tpu.memory_space<vmem>>, %arg8: memref<4x8x1xf32, #tpu.memory_space<vmem>>, %arg9: memref<4x8x16xf32, #tpu.memory_space<vmem>>) attributes {dimension_semantics = [#tpu.dimension_semantics<parallel>, #tpu.dimension_semantics<parallel>, #tpu.dimension_semantics<arbitrary>], iteration_bounds = array<i64: 2, 1, 1>, scalar_prefetch = 0 : i64, scratch_operands = 3 : i64, tpu.core_type = #tpu.core_type<tc>, window_params = [{transform_indices = @transform_0, window_bounds = array<i64: 1, 4, 8, 16>}, {transform_indices = @transform_1, window_bounds = array<i64: 1, 4, 8, 16>}, {transform_indices = @transform_2, window_bounds = array<i64: 1, 4, 8, 16>}, {transform_indices = @transform_3, window_bounds = array<i64: 1, 4, 8, 16>}]} {
    %c0_i32 = arith.constant 0 : i32
    %0 = arith.cmpi eq, %arg2, %c0_i32 : i32
    %1 = arith.extui %0 : i1 to i32
    %c0_i32_0 = arith.constant 0 : i32
    %2 = arith.cmpi ne, %1, %c0_i32_0 : i32
    scf.if %2 {
      %cst_36 = arith.constant 0xFF800000 : f32
      %37 = vector.broadcast %cst_36 : f32 to vector<4x8x1xf32>
      %c0_37 = arith.constant 0 : index
      %c0_38 = arith.constant 0 : index
      %c0_39 = arith.constant 0 : index
      %38 = vector.load %arg7[%c0_37, %c0_38, %c0_39] : memref<4x8x1xf32, #tpu.memory_space<vmem>>, vector<4x8x1xf32>
      tpu.vector_store %arg7[%c0_37, %c0_38, %c0_39], %37 {strides = array<i32>} : memref<4x8x1xf32, #tpu.memory_space<vmem>>, vector<4x8x1xf32>,
      %cst_40 = arith.constant 0.000000e+00 : f32
      %39 = vector.broadcast %cst_40 : f32 to vector<4x8x1xf32>
      %c0_41 = arith.constant 0 : index
      %c0_42 = arith.constant 0 : index
      %c0_43 = arith.constant 0 : index
      %40 = vector.load %arg8[%c0_41, %c0_42, %c0_43] : memref<4x8x1xf32, #tpu.memory_space<vmem>>, vector<4x8x1xf32>
      tpu.vector_store %arg8[%c0_41, %c0_42, %c0_43], %39 {strides = array<i32>} : memref<4x8x1xf32, #tpu.memory_space<vmem>>, vector<4x8x1xf32>,
      %cst_44 = arith.constant 0.000000e+00 : f32
      %41 = vector.broadcast %cst_44 : f32 to vector<4x8x16xf32>
      %c0_45 = arith.constant 0 : index
      %c0_46 = arith.constant 0 : index
      %c0_47 = arith.constant 0 : index
      %42 = vector.load %arg9[%c0_45, %c0_46, %c0_47] : memref<4x8x16xf32, #tpu.memory_space<vmem>>, vector<4x8x16xf32>
      tpu.vector_store %arg9[%c0_45, %c0_46, %c0_47], %41 {strides = array<i32>} : memref<4x8x16xf32, #tpu.memory_space<vmem>>, vector<4x8x16xf32>,
    } else {
    }
    %c0 = arith.constant 0 : index
    %c0_1 = arith.constant 0 : index
    %c0_2 = arith.constant 0 : index
    %c0_3 = arith.constant 0 : index
    %3 = vector.load %arg3[%c0, %c0_1, %c0_2, %c0_3] : memref<1x4x8x16xf32, #tpu.memory_space<vmem>>, vector<1x4x8x16xf32>
    %4 = vector.shape_cast %3 : vector<1x4x8x16xf32> to vector<4x8x16xf32>
    %cst = arith.constant 2.500000e-01 : f32
    %5 = vector.broadcast %cst : f32 to vector<4x8x16xf32>
    %6 = arith.mulf %4, %5 : vector<4x8x16xf32>
    %c0_4 = arith.constant 0 : index
    %c0_5 = arith.constant 0 : index
    %c0_6 = arith.constant 0 : index
    %c0_7 = arith.constant 0 : index
    %7 = vector.load %arg4[%c0_4, %c0_5, %c0_6, %c0_7] : memref<1x4x8x16xf32, #tpu.memory_space<vmem>>, vector<1x4x8x16xf32>
    %8 = vector.shape_cast %7 : vector<1x4x8x16xf32> to vector<4x8x16xf32>
    %c0_8 = arith.constant 0 : index
    %c0_9 = arith.constant 0 : index
    %c0_10 = arith.constant 0 : index
    %c0_11 = arith.constant 0 : index
    %9 = vector.load %arg5[%c0_8, %c0_9, %c0_10, %c0_11] : memref<1x4x8x16xf32, #tpu.memory_space<vmem>>, vector<1x4x8x16xf32>
    %10 = vector.shape_cast %9 : vector<1x4x8x16xf32> to vector<4x8x16xf32>
    "tpu.trace_start"() <{level = 10 : i32, message = "hqd,hkd->hqk"}> : () -> ()
    %cst_12 = arith.constant dense<0.000000e+00> : vector<4x8x8xf32>
    %11 = tpu.matmul %6, %8, %cst_12 {dimension_numbers = #tpu.dot_dimension_numbers<[2], [2], [1], [1], [0, 0, 0, 1, 1, 1], [0], [0]>} : vector<4x8x16xf32>, vector<4x8x16xf32>, vector<4x8x8xf32> -> vector<4x8x8xf32>
    "tpu.trace_stop"() : () -> ()
    %c0_13 = arith.constant 0 : index
    %c0_14 = arith.constant 0 : index
    %c0_15 = arith.constant 0 : index
    %12 = vector.load %arg7[%c0_13, %c0_14, %c0_15] : memref<4x8x1xf32, #tpu.memory_space<vmem>>, vector<4x8x1xf32>
    %cst_16 = arith.constant dense<0xFF800000> : vector<4x8xf32>
    %13 = vector.multi_reduction <maximumf>, %11, %cst_16 [2] : vector<4x8x8xf32> to vector<4x8xf32>
    %14 = vector.shape_cast %13 : vector<4x8xf32> to vector<4x8x1xf32>
    %15 = arith.maximumf %12, %14 : vector<4x8x1xf32>
    %16 = arith.subf %12, %15 : vector<4x8x1xf32>
    %17 = math.exp %16 : vector<4x8x1xf32>
    %18 = vector.broadcast %15 : vector<4x8x1xf32> to vector<4x8x8xf32>
    %19 = arith.subf %11, %18 : vector<4x8x8xf32>
    %20 = math.exp %19 : vector<4x8x8xf32>
    %c0_17 = arith.constant 0 : index
    %c0_18 = arith.constant 0 : index
    %c0_19 = arith.constant 0 : index
    %21 = vector.load %arg8[%c0_17, %c0_18, %c0_19] : memref<4x8x1xf32, #tpu.memory_space<vmem>>, vector<4x8x1xf32>
    %22 = arith.mulf %17, %21 : vector<4x8x1xf32>
    %cst_20 = arith.constant dense<0.000000e+00> : vector<4x8xf32>
    %23 = vector.multi_reduction <add>, %20, %cst_20 [2] : vector<4x8x8xf32> to vector<4x8xf32>
    %24 = vector.shape_cast %23 : vector<4x8xf32> to vector<4x8x1xf32>
    %25 = arith.addf %22, %24 : vector<4x8x1xf32>
    %c0_21 = arith.constant 0 : index
    %c0_22 = arith.constant 0 : index
    %c0_23 = arith.constant 0 : index
    %26 = vector.load %arg8[%c0_21, %c0_22, %c0_23] : memref<4x8x1xf32, #tpu.memory_space<vmem>>, vector<4x8x1xf32>
    tpu.vector_store %arg8[%c0_21, %c0_22, %c0_23], %25 {strides = array<i32>} : memref<4x8x1xf32, #tpu.memory_space<vmem>>, vector<4x8x1xf32>,
    %c0_24 = arith.constant 0 : index
    %c0_25 = arith.constant 0 : index
    %c0_26 = arith.constant 0 : index
    %27 = vector.load %arg9[%c0_24, %c0_25, %c0_26] : memref<4x8x16xf32, #tpu.memory_space<vmem>>, vector<4x8x16xf32>
    %28 = vector.broadcast %17 : vector<4x8x1xf32> to vector<4x8x16xf32>
    %29 = arith.mulf %28, %27 : vector<4x8x16xf32>
    "tpu.trace_start"() <{level = 10 : i32, message = "hqk,hkd->hqd"}> : () -> ()
    %cst_27 = arith.constant dense<0.000000e+00> : vector<4x8x16xf32>
    %30 = tpu.matmul %20, %10, %cst_27 {dimension_numbers = #tpu.dot_dimension_numbers<[2], [1], [1], [2], [0, 0, 0, 1, 1, 2], [0], [0]>} : vector<4x8x8xf32>, vector<4x8x16xf32>, vector<4x8x16xf32> -> vector<4x8x16xf32>
    "tpu.trace_stop"() : () -> ()
    %31 = arith.addf %29, %30 : vector<4x8x16xf32>
    %c0_28 = arith.constant 0 : index
    %c0_29 = arith.constant 0 : index
    %c0_30 = arith.constant 0 : index
    %32 = vector.load %arg9[%c0_28, %c0_29, %c0_30] : memref<4x8x16xf32, #tpu.memory_space<vmem>>, vector<4x8x16xf32>
    tpu.vector_store %arg9[%c0_28, %c0_29, %c0_30], %31 {strides = array<i32>} : memref<4x8x16xf32, #tpu.memory_space<vmem>>, vector<4x8x16xf32>,
    %c0_31 = arith.constant 0 : index
    %c0_32 = arith.constant 0 : index
    %c0_33 = arith.constant 0 : index
    %33 = vector.load %arg7[%c0_31, %c0_32, %c0_33] : memref<4x8x1xf32, #tpu.memory_space<vmem>>, vector<4x8x1xf32>
    tpu.vector_store %arg7[%c0_31, %c0_32, %c0_33], %15 {strides = array<i32>} : memref<4x8x1xf32, #tpu.memory_space<vmem>>, vector<4x8x1xf32>,
    %c0_i32_34 = arith.constant 0 : i32
    %34 = arith.cmpi eq, %arg2, %c0_i32_34 : i32
    %35 = arith.extui %34 : i1 to i32
    %c0_i32_35 = arith.constant 0 : i32
    %36 = arith.cmpi ne, %35, %c0_i32_35 : i32
    scf.if %36 {
      %c0_36 = arith.constant 0 : index
      %c0_37 = arith.constant 0 : index
      %c0_38 = arith.constant 0 : index
      %37 = vector.load %arg8[%c0_36, %c0_37, %c0_38] : memref<4x8x1xf32, #tpu.memory_space<vmem>>, vector<4x8x1xf32>
      %38 = tpu.reciprocal %37 {approx = true} : vector<4x8x1xf32> -> vector<4x8x1xf32>
      %c0_39 = arith.constant 0 : index
      %c0_40 = arith.constant 0 : index
      %c0_41 = arith.constant 0 : index
      %39 = vector.load %arg9[%c0_39, %c0_40, %c0_41] : memref<4x8x16xf32, #tpu.memory_space<vmem>>, vector<4x8x16xf32>
      %40 = vector.broadcast %38 : vector<4x8x1xf32> to vector<4x8x16xf32>
      %41 = arith.mulf %39, %40 : vector<4x8x16xf32>
      %c0_42 = arith.constant 0 : index
      %c0_43 = arith.constant 0 : index
      %c0_44 = arith.constant 0 : index
      %c0_45 = arith.constant 0 : index
      %42 = vector.load %arg6[%c0_42, %c0_43, %c0_44, %c0_45] : memref<1x4x8x16xf32, #tpu.memory_space<vmem>>, vector<1x4x8x16xf32>
      %43 = vector.shape_cast %42 : vector<1x4x8x16xf32> to vector<4x8x16xf32>
      %44 = vector.shape_cast %41 : vector<4x8x16xf32> to vector<1x4x8x16xf32>
      tpu.vector_store %arg6[%c0_42, %c0_43, %c0_44, %c0_45], %44 {strides = array<i32>} : memref<1x4x8x16xf32, #tpu.memory_space<vmem>>, vector<1x4x8x16xf32>,
    } else {
    }
    return
  }
  func.func @transform_0(%arg0: i32, %arg1: i32, %arg2: i32) -> (i32, i32, i32, i32) {
    %c0_i32 = arith.constant 0 : i32
    %c0_i32_0 = arith.constant 0 : i32
    %c0_i32_1 = arith.constant 0 : i32
    return %arg0, %c0_i32, %arg1, %c0_i32_0 : i32, i32, i32, i32
  }
  func.func @transform_1(%arg0: i32, %arg1: i32, %arg2: i32) -> (i32, i32, i32, i32) {
    %c0_i32 = arith.constant 0 : i32
    %c0_i32_0 = arith.constant 0 : i32
    %c0_i32_1 = arith.constant 0 : i32
    return %arg0, %c0_i32, %arg2, %c0_i32_0 : i32, i32, i32, i32
  }
  func.func @transform_2(%arg0: i32, %arg1: i32, %arg2: i32) -> (i32, i32, i32, i32) {
    %c0_i32 = arith.constant 0 : i32
    %c0_i32_0 = arith.constant 0 : i32
    %c0_i32_1 = arith.constant 0 : i32
    return %arg0, %c0_i32, %arg2, %c0_i32_0 : i32, i32, i32, i32
  }
  func.func @transform_3(%arg0: i32, %arg1: i32, %arg2: i32) -> (i32, i32, i32, i32) {
    %c0_i32 = arith.constant 0 : i32
    %c0_i32_0 = arith.constant 0 : i32
    %c0_i32_1 = arith.constant 0 : i32
    return %arg0, %c0_i32, %arg1, %c0_i32_0 : i32, i32, i32, i32
  }
}

module attributes {stable_mosaic.version = 11 : i64} {
  func.func @_linear_kernel(%arg0: i32, %arg1: memref<16x32xf32, #tpu.memory_space<vmem>>, %arg2: memref<32x192xf32, #tpu.memory_space<vmem>>, %arg3: memref<16x192xf32, #tpu.memory_space<vmem>>) attributes {dimension_semantics = [#tpu.dimension_semantics<parallel>], iteration_bounds = array<i64: 1>, scalar_prefetch = 0 : i64, scratch_operands = 0 : i64, tpu.core_type = #tpu.core_type<tc>, window_params = [{transform_indices = @transform_0, window_bounds = array<i64: 16, 32>}, {pipeline_mode = #tpu.pipeline_mode<synchronous>, transform_indices = @transform_1, window_bounds = array<i64: 32, 192>}, {transform_indices = @transform_2, window_bounds = array<i64: 16, 192>}]} {
    %c0 = arith.constant 0 : index
    %c0_0 = arith.constant 0 : index
    %0 = vector.load %arg1[%c0, %c0_0] : memref<16x32xf32, #tpu.memory_space<vmem>>, vector<16x32xf32>
    %c0_1 = arith.constant 0 : index
    %c0_2 = arith.constant 0 : index
    %1 = vector.load %arg2[%c0_1, %c0_2] : memref<32x192xf32, #tpu.memory_space<vmem>>, vector<32x192xf32>
    %cst = arith.constant dense<0.000000e+00> : vector<16x192xf32>
    %2 = tpu.matmul %0, %1, %cst {dimension_numbers = #tpu.dot_dimension_numbers<[1], [0], [0], [1], [0, 0, 1, 1], [], []>} : vector<16x32xf32>, vector<32x192xf32>, vector<16x192xf32> -> vector<16x192xf32>
    %c0_3 = arith.constant 0 : index
    %c0_4 = arith.constant 0 : index
    %3 = vector.load %arg3[%c0_3, %c0_4] : memref<16x192xf32, #tpu.memory_space<vmem>>, vector<16x192xf32>
    tpu.vector_store %arg3[%c0_3, %c0_4], %2 {strides = array<i32>} : memref<16x192xf32, #tpu.memory_space<vmem>>, vector<16x192xf32>,
    return
  }
  func.func @transform_0(%arg0: i32) -> (i32, i32) {
    %c0_i32 = arith.constant 0 : i32
    %c0_i32_0 = arith.constant 0 : i32
    return %arg0, %c0_i32 : i32, i32
  }
  func.func @transform_1(%arg0: i32) -> (i32, i32) {
    %c0_i32 = arith.constant 0 : i32
    %c0_i32_0 = arith.constant 0 : i32
    %c0_i32_1 = arith.constant 0 : i32
    return %c0_i32, %c0_i32_0 : i32, i32
  }
  func.func @transform_2(%arg0: i32) -> (i32, i32) {
    %c0_i32 = arith.constant 0 : i32
    %c0_i32_0 = arith.constant 0 : i32
    return %arg0, %c0_i32 : i32, i32
  }
}

module attributes {stable_mosaic.version = 11 : i64} {
  func.func @_linear_kernel(%arg0: i32, %arg1: memref<16x64xf32, #tpu.memory_space<vmem>>, %arg2: memref<64x32xf32, #tpu.memory_space<vmem>>, %arg3: memref<16x32xf32, #tpu.memory_space<vmem>>) attributes {dimension_semantics = [#tpu.dimension_semantics<parallel>], iteration_bounds = array<i64: 1>, scalar_prefetch = 0 : i64, scratch_operands = 0 : i64, tpu.core_type = #tpu.core_type<tc>, window_params = [{transform_indices = @transform_0, window_bounds = array<i64: 16, 64>}, {pipeline_mode = #tpu.pipeline_mode<synchronous>, transform_indices = @transform_1, window_bounds = array<i64: 64, 32>}, {transform_indices = @transform_2, window_bounds = array<i64: 16, 32>}]} {
    %c0 = arith.constant 0 : index
    %c0_0 = arith.constant 0 : index
    %0 = vector.load %arg1[%c0, %c0_0] : memref<16x64xf32, #tpu.memory_space<vmem>>, vector<16x64xf32>
    %c0_1 = arith.constant 0 : index
    %c0_2 = arith.constant 0 : index
    %1 = vector.load %arg2[%c0_1, %c0_2] : memref<64x32xf32, #tpu.memory_space<vmem>>, vector<64x32xf32>
    %cst = arith.constant dense<0.000000e+00> : vector<16x32xf32>
    %2 = tpu.matmul %0, %1, %cst {dimension_numbers = #tpu.dot_dimension_numbers<[1], [0], [0], [1], [0, 0, 1, 1], [], []>} : vector<16x64xf32>, vector<64x32xf32>, vector<16x32xf32> -> vector<16x32xf32>
    %c0_3 = arith.constant 0 : index
    %c0_4 = arith.constant 0 : index
    %3 = vector.load %arg3[%c0_3, %c0_4] : memref<16x32xf32, #tpu.memory_space<vmem>>, vector<16x32xf32>
    tpu.vector_store %arg3[%c0_3, %c0_4], %2 {strides = array<i32>} : memref<16x32xf32, #tpu.memory_space<vmem>>, vector<16x32xf32>,
    return
  }
  func.func @transform_0(%arg0: i32) -> (i32, i32) {
    %c0_i32 = arith.constant 0 : i32
    %c0_i32_0 = arith.constant 0 : i32
    return %arg0, %c0_i32 : i32, i32
  }
  func.func @transform_1(%arg0: i32) -> (i32, i32) {
    %c0_i32 = arith.constant 0 : i32
    %c0_i32_0 = arith.constant 0 : i32
    %c0_i32_1 = arith.constant 0 : i32
    return %c0_i32, %c0_i32_0 : i32, i32
  }
  func.func @transform_2(%arg0: i32) -> (i32, i32) {
    %c0_i32 = arith.constant 0 : i32
    %c0_i32_0 = arith.constant 0 : i32
    return %arg0, %c0_i32 : i32, i32
  }
}

</mosaic_0001>

<bundles_post_ra>
// kernel: attention_forward.3
= control target key start
LH: loop header
LB: loop body
LE: loop exit
PB: predicated region body
PF: predicated region fallthrough
CT: control target
= control target key end

     0   :  { %7 = vsyncpa [#allocation3], 0  ;;  %s226_s0 = inlined_call_operand.hbm [shape: f32[16,32], index: 0, kind: input, shape index: {}]   ;;  %s227_s1 = inlined_call_operand.hbm [shape: f32[32,192], index: 1, kind: input, shape index: {}]   ;;  %s228_s2 = inlined_call_operand.vmem [shape: f32[16,192], index: 2, kind: output, shape index: {}]  }
   0x1   :  { %s13_s11 = sshll.u32 %s226_s0, 4  ;;  %s14_s11 = int_to_ptr.hbm [resolvable:$true] %s13_s11 }
   0x2   :  { %8 = vsyncpa [#allocation5], 0  ;;  %s187_s12 = smov [#allocation2]   ;;  %s26_s16 = sshll.u32 %s227_s1, 4  ;;  %s27_s16 = int_to_ptr.hbm [resolvable:$true] %s26_s16 }
   0x3   :  { %s15_s13 = sshll.u32 %s187_s12, 4  ;;  %s188_s17 = smov 128   ;;  %s16_s13 = int_to_ptr.vmem [resolvable:$true] %s15_s13 }
   0x4   :  { %s189_s18 = smov 8   ;;  %s190_s19 = smov [#allocation4]  }
   0x5   :  { %21 = dma.hbm_to_vmem [thread:$0]  %s14_s11, 256, %s16_s13, [#allocation3], %s188_s17, %s188_s17, %s189_s18  }
   0x6   :  { %s28_s20 = sshll.u32 %s190_s19, 4  ;;  %s191_s21 = smov 256   ;;  %s29_s20 = int_to_ptr.vmem [resolvable:$true] %s28_s20 }
   0x7   :  { %s192_s22 = smov 16  }
   0x8   :  { %34 = dma.hbm_to_vmem [thread:$0]  %s27_s16, 1024, %s29_s20, [#allocation5], %s191_s21, %s191_s21, %s192_s22  }
   0x9   :  { %183 = dma.done.wait [#allocation3], 256  }
   0xa   :  { %184 = vsyncadd [#allocation3], 4294967040 }
   0xb   :  { %185 = dma.done.wait [#allocation5], 1024  }
   0xc   :  { %186 = vsyncadd [#allocation5], 4294966272  ;;  %v51_v0 = vld [vmem:[#allocation4 + $0x30] sm:$0xff]  ;;  %v52_v1 = vld [vmem:[#allocation4 + $0x38] sm:$0xff]  ;;  %vm53_vm0 = vcmask 261120   ;;  %vm107_vm1 = vcmask 523264  }
   0xd   :  { %v49_v2 = vld [vmem:[#allocation4 + $0x20] sm:$0xff]  ;;  %121 = vmatpush.msra.mxu2 %v51_v0  ;;  %125 = vmatpush.msra.mxu3 %v52_v1  ;;  %v50_v3 = vld [vmem:[#allocation4 + $0x28] sm:$0xff]  ;;  %v47_v4 = vld [vmem:[#allocation4 + $0x10] sm:$0xff] }
   0xe   :  { %v48_v5 = vld [vmem:[#allocation4 + $0x18] sm:$0xff]  ;;  %72 = vmatpush.msra.mxu0 %v51_v0  ;;  %95 = vmatpush.msra.mxu1 %v52_v1  ;;  %v45_v6 = vld [vmem:[#allocation4] sm:$0xff]  ;;  %v46_v7 = vld [vmem:[#allocation4 + $0x8] sm:$0xff] }
   0xf   :  { %122 = vmatpush.msra.mxu2 %v49_v2  ;;  %126 = vmatpush.msra.mxu3 %v50_v3  ;;  %v44_v8 = vld [vmem:[#allocation2 + $0x8] sm:$0xff]  ;;  %v43_v9 = vld [vmem:[#allocation2] sm:$0xff] }
  0x10   :  { %73 = vmatpush.msra.mxu0 %v49_v2  ;;  %96 = vmatpush.msra.mxu1 %v50_v3 }
  0x11   :  { %123 = vmatpush.msra.mxu2 %v47_v4  ;;  %127 = vmatpush.msra.mxu3 %v48_v5 }
  0x12   :  { %74 = vmatpush.msra.mxu0 %v47_v4  ;;  %97 = vmatpush.msra.mxu1 %v48_v5 }
  0x13   :  { %124 = vmatpush.msra.mxu2 %v45_v6  ;;  %128 = vmatpush.msra.mxu3 %v46_v7 }
  0x14   :  { %118 = vmatmul.msk.f32.vlgmr.msra.gmra.mxu2 %vm53_vm0, %v44_v8  ;;  %120 = vmatmul.msk.f32.vlgmr.msra.gmra.mxu3 %vm53_vm0, %v44_v8 }
  0x15   :  { %75 = vmatpush.msra.mxu0 %v45_v6  ;;  %98 = vmatpush.msra.mxu1 %v46_v7 }
  0x16   :  { %117 = vmatmul.msk.f32.vlgmr.msra.gmra.mxu0 %vm53_vm0, %v43_v9  ;;  %119 = vmatmul.msk.f32.vlgmr.msra.gmra.mxu1 %vm53_vm0, %v43_v9 }
  0x93   :  { %v77_v10 = vpop.f32.mrf.mxu0  ;;  %v100_v11 = vpop.f32.mrf.mxu1 }
  0x94   :  { %106 = vst [vmem:[%s228_s2] sm:$0xff] %v77_v10 }
  0x95   :  { %108 = vst.msk [vmem:[%s228_s2 + $0x8] sm:$0xff] %vm107_vm1, %v100_v11 }
  0x97   :  { %v80_v12 = vpop.f32.mrf.mxu2  ;;  %v103_v13 = vpop.f32.mrf.mxu3 }
  0x98   :  { %109 = vst [vmem:[%s228_s2 + $0x10] sm:$0xff] %v80_v12 }
  0x99   :  { %110 = vst.msk [vmem:[%s228_s2 + $0x18] sm:$0xff] %vm107_vm1, %v103_v13 }
  0x9a   :  { %115 = vsyncpa [#allocation3], 1 }
  0x9b   :  { %116 = vsyncpa [#allocation5], 1 }

// kernel: attention_forward.4
= control target key start
LH: loop header
LB: loop body
LE: loop exit
PB: predicated region body
PF: predicated region fallthrough
CT: control target
= control target key end

     0   :  { %s933_s12 = smov 0   ;;  %s935_s13 = smov 0   ;;  %s1038_s0 = inlined_call_operand.vmem [shape: f32[2,4,8,16], index: 0, kind: input, shape index: {}]   ;;  %s1039_s1 = inlined_call_operand.vmem [shape: f32[2,4,8,16], index: 1, kind: input, shape index: {}]   ;;  %s1040_s2 = inlined_call_operand.vmem [shape: f32[2,4,8,16], index: 2, kind: input, shape index: {}]   ;;  %s1041_s3 = inlined_call_operand.vmem [shape: f32[2,4,8,16], index: 3, kind: output, shape index: {}]  }
   0x1   :  { %s937_s14 = smov 0  }
   0x2 LB: > { %s32_s15 = sadd.s32 1, %s904_s13  ;;  %p805_p0 = scmp.ge.s32.totalorder %s908_s14, 1  ;;  %s908_s14 = sphi %s937_s14, %s13_s14   ;;  %s904_s13 = sphi %s935_s13, %s1043_s13   ;;  %s900_s12 = sphi %s933_s12, %s1042_s12  }
   0x3   : > { %p34_p1 = scmp.ge.s32.totalorder %s32_s15, 2  ;;  %p193_p2 = scmp.lt.s32.totalorder %s908_s14, 3 }
   0x5   : > { %s1045_s15 = smov (%p34_p1, %s32_s15), 0  ;;  %p194_p3 = pnand %p805_p0, %p193_p2 }
   0x6   : > { %p239_p4 = scmp.lt.s32.totalorder (!%p194_p3), %s900_s12, 1 }
   0x7   : > { %197 = sbr.rel (%p194_p3) target bundleno = 691 (0x2b3), region = 32 }
   0xc   : > { %s1047_s12 = smov (!%p239_p4, %s900_s12), 1  ;;  %vm284_vm0 = vcmask 130048   ;;  %vm275_vm1 = vcmask 7168   ;;  %v910_v12 = vmov -inf   ;;  %vm414_vm2 = vcmask 64512  }
   0xd   : > { %s951_s16 = sshll.u32 %s1047_s12, 5  ;;  %276 = vst.msk [vmem:[#allocation2] sm:$0xff] %vm275_vm1, %v910_v12  ;;  %v911_v21 = vmov 0   ;;  %v912_v22 = vmov 0.0  }
   0xe   : > { %s254_s19 = scalar_lea.vmem %s1039_s1, %s951_s16  ;;  %s246_s22 = scalar_lea.vmem %s1038_s0, %s951_s16  ;;  %277 = vst.msk [vmem:[#allocation2 + $0x8] sm:$0xff] %vm275_vm1, %v910_v12  ;;  %859 = vset.pattern.permute.xlu0 %v911_v21  ;;  %861 = vset.pattern.permute.xlu2 %v911_v21 }
   0xf   : > { %v297_v0 = vld [vmem:[%s254_s19] sm:$0xff]  ;;  %v299_v1 = vld [vmem:[%s254_s19 + $0x10] sm:$0xff]  ;;  %v298_v5 = vld [vmem:[%s254_s19 + $0x8] sm:$0xff]  ;;  %278 = vst.msk [vmem:[#allocation2 + $0x10] sm:$0xff] %vm275_vm1, %v910_v12  ;;  %860 = vset.pattern.permute.xlu1 %v911_v21  ;;  %s262_s25 = scalar_lea.vmem %s1040_s2, %s951_s16  ;;  %s270_s28 = scalar_lea.vmem %s1041_s3, %s951_s16 }
  0x10   : > { %v289_v2 = vld [vmem:[%s246_s22] sm:$0xff]  ;;  %814 = vmatpush.xpose.msk.msra.mxu0 %vm284_vm0, %v297_v0  ;;  %818 = vmatpush.xpose.msk.msra.mxu2 %vm284_vm0, %v299_v1  ;;  %v291_v4 = vld [vmem:[%s246_s22 + $0x10] sm:$0xff]  ;;  %v300_v6 = vld [vmem:[%s254_s19 + $0x18] sm:$0xff]  ;;  %279 = vst.msk [vmem:[#allocation2 + $0x18] sm:$0xff] %vm275_vm1, %v910_v12 }
  0x11   : > { %v293_v3 = vmul.f32 0.25, %v289_v2  ;;  %v295_v7 = vmul.f32 0.25, %v291_v4  ;;  %816 = vmatpush.xpose.msk.msra.mxu1 %vm284_vm0, %v298_v5  ;;  %820 = vmatpush.xpose.msk.msra.mxu3 %vm284_vm0, %v300_v6  ;;  %v290_v8 = vld [vmem:[%s246_s22 + $0x8] sm:$0xff]  ;;  %v292_v9 = vld [vmem:[%s246_s22 + $0x18] sm:$0xff]  ;;  %282 = vst.msk [vmem:[#allocation3 + $0x10] sm:$0xff] %vm275_vm1, %v912_v22  ;;  %v303_v39 = vld [vmem:[%s262_s25 + $0x10] sm:$0xff] }
  0x12   : > { %v294_v10 = vmul.f32 0.25, %v290_v8  ;;  %v296_v11 = vmul.f32 0.25, %v292_v9  ;;  %280 = vst.msk [vmem:[#allocation3] sm:$0xff] %vm275_vm1, %v912_v22  ;;  %v304_v40 = vld [vmem:[%s262_s25 + $0x18] sm:$0xff]  ;;  %v301_v41 = vld [vmem:[%s262_s25] sm:$0xff]  ;;  %v302_v42 = vld [vmem:[%s262_s25 + $0x8] sm:$0xff] }
  0x13   : > { %815 = vmatmul.msk.f32.vlgmr.msra.gmra.mxu0 %vm284_vm0, %v293_v3  ;;  %819 = vmatmul.msk.f32.vlgmr.msra.gmra.mxu2 %vm284_vm0, %v295_v7  ;;  %281 = vst.msk [vmem:[#allocation3 + $0x8] sm:$0xff] %vm275_vm1, %v912_v22 }
  0x14   : > { %817 = vmatmul.msk.f32.vlgmr.msra.gmra.mxu1 %vm284_vm0, %v294_v10  ;;  %821 = vmatmul.msk.f32.vlgmr.msra.gmra.mxu3 %vm284_vm0, %v296_v11  ;;  %283 = vst.msk [vmem:[#allocation3 + $0x18] sm:$0xff] %vm275_vm1, %v912_v22  ;;  %v991_v23 = vld [vmem:[#allocation2] sm:$0xff] }
  0x15   : > { %285 = vst.msk [vmem:[#allocation4] sm:$0xff] %vm284_vm0, %v912_v22  ;;  %v411_v29 = vld [vmem:[#allocation2 + $0x8] sm:$0xff]  ;;  %596 = vmatpush.msrb.mxu2 %v303_v39  ;;  %619 = vmatpush.msrb.mxu3 %v304_v40 }
  0x16   : > { %286 = vst.msk [vmem:[#allocation4 + $0x8] sm:$0xff] %vm284_vm0, %v912_v22  ;;  %v412_v27 = vld [vmem:[#allocation2 + $0x10] sm:$0xff]  ;;  %550 = vmatpush.msrb.mxu0 %v301_v41  ;;  %573 = vmatpush.msrb.mxu1 %v302_v42 }
  0x17   : > { %287 = vst.msk [vmem:[#allocation4 + $0x10] sm:$0xff] %vm284_vm0, %v912_v22  ;;  %v413_v35 = vld [vmem:[#allocation2 + $0x18] sm:$0xff] }
  0x18   : > { %288 = vst.msk [vmem:[#allocation4 + $0x18] sm:$0xff] %vm284_vm0, %v912_v22  ;;  %v477_v6 = vld [vmem:[#allocation3 + $0x10] sm:$0xff] }
  0x19   : > { %v475_v12 = vld [vmem:[#allocation3] sm:$0xff] }
  0x1b   : > { %v478_v40 = vld [vmem:[#allocation3 + $0x18] sm:$0xff] }
  0x90   : > { %v973_v13 = vpop.f32.mrf.mxu0 }
  0x91   : > { %v415_v14 = vsel %vm414_vm2, %v973_v13, -inf  ;;  %v977_v15 = vpop.f32.mrf.mxu1 }
  0x92   : > { %416 = vmax.xlane.f32.xlu1 %v415_v14  ;;  %v418_v18 = vsel %vm414_vm2, %v977_v15, -inf }
  0x96   : > { %v381_v16 = vpop.f32.mrf.mxu2 }
  0x97   : > { %v421_v17 = vsel %vm414_vm2, %v381_v16, -inf  ;;  %v407_v19 = vpop.f32.mrf.mxu3 }
  0x98   : > { %422 = vmax.xlane.f32.xlu0 %v421_v17  ;;  %v424_v20 = vsel %vm414_vm2, %v407_v19, -inf  ;;  %v476_v17 = vld [vmem:[#allocation3 + $0x8] sm:$0xff] }
  0x9a   : > { %419 = vmax.xlane.f32.xlu1 %v418_v18  ;;  %v504_v18 = vld [vmem:[#allocation4] sm:$0xff] }
  0xa0   : > { %425 = vmax.xlane.f32.xlu0 %v424_v20 }
 0x105   : > { %v417_v24 = vpop.xlane.xlu1 %416 }
 0x106   : > { %v427_v25 = vmax.f32 %v991_v23, %v417_v24 }
 0x108   : > { %v431_v26 = vsub.f32 %v991_v23, %v427_v25  ;;  %632 = vst.msk [vmem:[#allocation2] sm:$0xff] %vm275_vm1, %v427_v25  ;;  %445 = vperm.xlu0 %859, %v427_v25  }
 0x10a   : > { %v435_v62 = vmul.f32 1.442695, %v431_v26 }
 0x10b   : > { %v423_v28 = vpop.xlane.xlu0 %422 }
 0x10c   : > { %v429_v30 = vmax.f32 %v412_v27, %v423_v28 }
 0x10d   : > { %v420_v31 = vpop.xlane.xlu1 %419 }
 0x10e   : > { %v433_v32 = vsub.f32 %v412_v27, %v429_v30  ;;  %634 = vst.msk [vmem:[#allocation2 + $0x10] sm:$0xff] %vm275_vm1, %v429_v30  ;;  %v428_v33 = vmax.f32 %v411_v29, %v420_v31  ;;  %455 = vperm.xlu2 %861, %v429_v30   ;;  %v506_v27 = vld [vmem:[#allocation4 + $0x10] sm:$0xff] }
 0x110   : > { %v432_v34 = vsub.f32 %v411_v29, %v428_v33  ;;  %633 = vst.msk [vmem:[#allocation2 + $0x8] sm:$0xff] %vm275_vm1, %v428_v33  ;;  %450 = vperm.xlu1 %860, %v428_v33   ;;  %v439_v63 = vmul.f32 1.442695, %v433_v32 }
 0x112   : > { %v437_v0 = vmul.f32 1.442695, %v432_v34 }
 0x113   : > { %v426_v36 = vpop.xlane.xlu0 %425 }
 0x114   : > { %v430_v37 = vmax.f32 %v413_v35, %v426_v36 }
 0x116   : > { %v434_v38 = vsub.f32 %v413_v35, %v430_v37  ;;  %635 = vst.msk [vmem:[#allocation2 + $0x18] sm:$0xff] %vm275_vm1, %v430_v37  ;;  %460 = vperm.xlu2 %861, %v430_v37   ;;  %v505_v35 = vld [vmem:[#allocation4 + $0x8] sm:$0xff] }
 0x118   : > { %v441_v5 = vmul.f32 1.442695, %v434_v38 }
 0x168   : > { %v456_v43 = vpop.permute.xlu2 %455 }
 0x169   : > { %v465_v44 = vsub.f32 %v381_v16, %v456_v43 }
 0x16b   : > { %v471_v45 = vmul.f32 1.442695, %v465_v44  ;;  %v507_v44 = vld [vmem:[#allocation4 + $0x18] sm:$0xff] }
 0x16d   : > { %862 = vpow2.f32 %v471_v45 }
 0x170   : > { %v461_v46 = vpop.permute.xlu2 %460 }
 0x171   : > { %v466_v47 = vsub.f32 %v407_v19, %v461_v46 }
 0x173   : > { %v863_v48 = vpop.eup %862  ;;  %v473_v49 = vmul.f32 1.442695, %v466_v47 }
 0x174   : > { %824 = vmatmul.msk.f32.vlgmr.msrb.gmra.mxu2 %vm414_vm2, %v863_v48  ;;  %v489_v50 = vsel %vm414_vm2, %v863_v48, 0.0 }
 0x175   : > { %864 = vpow2.f32 %v473_v49  ;;  %490 = vadd.xlane.f32.xlu0 %v489_v50 }
 0x17a   : > { %v446_v51 = vpop.permute.xlu0 %445 }
 0x17b   : > { %v865_v52 = vpop.eup %864  ;;  %v463_v53 = vsub.f32 %v973_v13, %v446_v51 }
 0x17c   : > { %825 = vmatmul.msk.f32.vlgmr.msrb.gmra.mxu3 %vm414_vm2, %v865_v52  ;;  %v492_v4 = vsel %vm414_vm2, %v865_v52, 0.0 }
 0x17d   : > { %v467_v54 = vmul.f32 1.442695, %v463_v53 }
 0x17f   : > { %866 = vpow2.f32 %v467_v54 }
 0x182   : > { %v451_v55 = vpop.permute.xlu1 %450 }
 0x183   : > { %v464_v56 = vsub.f32 %v977_v15, %v451_v55 }
 0x185   : > { %v867_v57 = vpop.eup %866  ;;  %v469_v58 = vmul.f32 1.442695, %v464_v56 }
 0x186   : > { %822 = vmatmul.msk.f32.vlgmr.msrb.gmra.mxu0 %vm414_vm2, %v867_v57  ;;  %v483_v59 = vsel %vm414_vm2, %v867_v57, 0.0 }
 0x187   : > { %868 = vpow2.f32 %v469_v58  ;;  %484 = vadd.xlane.f32.xlu2 %v483_v59 }
 0x188   : > { %870 = vpow2.f32 %v435_v62 }
 0x189   : > { %872 = vpow2.f32 %v439_v63 }
 0x18a   : > { %874 = vpow2.f32 %v437_v0 }
 0x18b   : > { %876 = vpow2.f32 %v441_v5 }
 0x18d   : > { %v869_v60 = vpop.eup %868 }
 0x18e   : > { %823 = vmatmul.msk.f32.vlgmr.msrb.gmra.mxu1 %vm414_vm2, %v869_v60  ;;  %v486_v61 = vsel %vm414_vm2, %v869_v60, 0.0  ;;  %v871_v1 = vpop.eup %870 }
 0x18f   : > { %487 = vadd.xlane.f32.xlu1 %v486_v61  ;;  %v873_v2 = vpop.eup %872  ;;  %v479_v14 = vmul.f32 %v871_v1, %v475_v12 }
 0x190   : > { %v875_v3 = vpop.eup %874  ;;  %v481_v8 = vmul.f32 %v873_v2, %v477_v6 }
 0x191   : > { %v877_v7 = vpop.eup %876  ;;  %v480_v19 = vmul.f32 %v875_v3, %v476_v17 }
 0x192   : > { %v482_v41 = vmul.f32 %v877_v7, %v478_v40 }
 0x19f   : > { %510 = vperm.xlu2 %861, %v871_v1  }
 0x1a7   : > { %520 = vperm.xlu2 %861, %v873_v2  }
 0x1a8   : > { %515 = vperm.xlu1 %860, %v875_v3  }
 0x1d0   : > { %493 = vadd.xlane.f32.xlu2 %v492_v4 }
 0x1e8   : > { %v491_v9 = vpop.xlane.xlu0 %490  ;;  %525 = vperm.xlu2 %861, %v877_v7  }
 0x1e9   : > { %v497_v10 = vadd.f32 %v491_v9, %v481_v8 }
 0x1eb   : > { %502 = vst.msk [vmem:[#allocation3 + $0x10] sm:$0xff] %vm275_vm1, %v497_v10 }
 0x1f2   : > { %v641_v11 = vld [vmem:[#allocation3 + $0x10] sm:$0xff] }
 0x1f3   : > { %878 = vrcp.f32 %v641_v11 }
 0x1f7   : > { %v598_v31 = vpop.f32.mrf.mxu2 }
 0x1f9   : > { %v879_v13 = vpop.eup %878 }
 0x1fa   : > { %v485_v15 = vpop.xlane.xlu2 %484  ;;  %663 = vperm.xlu1 %860, %v879_v13  }
 0x1fb   : > { %v495_v16 = vadd.f32 %v485_v15, %v479_v14 }
 0x1fd   : > { %500 = vst.msk [vmem:[#allocation3] sm:$0xff] %vm275_vm1, %v495_v16 }
 0x1ff   : > { %v621_v47 = vpop.f32.mrf.mxu3 }
 0x202   : > { %v511_v20 = vpop.permute.xlu2 %510  ;;  %v488_v21 = vpop.xlane.xlu1 %487 }
 0x203   : > { %v528_v22 = vmul.f32 %v511_v20, %v504_v18  ;;  %v496_v23 = vadd.f32 %v488_v21, %v480_v19  ;;  %v552_v24 = vpop.f32.mrf.mxu0 }
 0x204   : > { %v639_v25 = vld [vmem:[#allocation3] sm:$0xff] }
 0x205   : > { %501 = vst.msk [vmem:[#allocation3 + $0x8] sm:$0xff] %vm275_vm1, %v496_v23  ;;  %v624_v26 = vadd.f32 %v552_v24, %v528_v22  ;;  %880 = vrcp.f32 %v639_v25 }
 0x207   : > { %628 = vst.msk [vmem:[#allocation4] sm:$0xff] %vm284_vm0, %v624_v26 }
 0x20a   : > { %v521_v28 = vpop.permute.xlu2 %520 }
 0x20b   : > { %v881_v29 = vpop.eup %880  ;;  %v530_v30 = vmul.f32 %v521_v28, %v506_v27  ;;  %v575_v38 = vpop.f32.mrf.mxu1 }
 0x20c   : > { %653 = vperm.xlu0 %859, %v881_v29   ;;  %v640_v32 = vld [vmem:[#allocation3 + $0x8] sm:$0xff] }
 0x20d   : > { %v626_v33 = vadd.f32 %v598_v31, %v530_v30  ;;  %882 = vrcp.f32 %v640_v32 }
 0x20e   : > { %v647_v57 = vld [vmem:[#allocation4] sm:$0xff] }
 0x20f   : > { %630 = vst.msk [vmem:[#allocation4 + $0x10] sm:$0xff] %vm284_vm0, %v626_v33 }
 0x213   : > { %v883_v34 = vpop.eup %882 }
 0x214   : > { %658 = vperm.xlu2 %861, %v883_v34  }
 0x216   : > { %v649_v51 = vld [vmem:[#allocation4 + $0x10] sm:$0xff] }
 0x21a   : > { %v516_v36 = vpop.permute.xlu1 %515 }
 0x21b   : > { %v529_v37 = vmul.f32 %v516_v36, %v505_v35 }
 0x21d   : > { %v625_v39 = vadd.f32 %v575_v38, %v529_v37 }
 0x21f   : > { %629 = vst.msk [vmem:[#allocation4 + $0x8] sm:$0xff] %vm284_vm0, %v625_v39 }
 0x226   : > { %v648_v54 = vld [vmem:[#allocation4 + $0x8] sm:$0xff] }
 0x243   : > { %v494_v42 = vpop.xlane.xlu2 %493 }
 0x244   : > { %v498_v43 = vadd.f32 %v494_v42, %v482_v41 }
 0x246   : > { %503 = vst.msk [vmem:[#allocation3 + $0x18] sm:$0xff] %vm275_vm1, %v498_v43 }
 0x24b   : > { %v526_v45 = vpop.permute.xlu2 %525 }
 0x24c   : > { %v531_v46 = vmul.f32 %v526_v45, %v507_v44 }
 0x24d   : > { %v642_v48 = vld [vmem:[#allocation3 + $0x18] sm:$0xff] }
 0x24e   : > { %v627_v49 = vadd.f32 %v621_v47, %v531_v46  ;;  %884 = vrcp.f32 %v642_v48 }
 0x250   : > { %631 = vst.msk [vmem:[#allocation4 + $0x18] sm:$0xff] %vm284_vm0, %v627_v49 }
 0x254   : > { %v885_v50 = vpop.eup %884 }
 0x255   : > { %668 = vperm.xlu2 %861, %v885_v50  }
 0x257   : > { %v650_v60 = vld [vmem:[#allocation4 + $0x18] sm:$0xff] }
 0x26c   : > { %v664_v52 = vpop.permute.xlu1 %663 }
 0x26d   : > { %v673_v53 = vmul.f32 %v664_v52, %v649_v51 }
 0x26e   : > { %v659_v55 = vpop.permute.xlu2 %658 }
 0x26f   : > { %677 = vst.msk [vmem:[%s270_s28 + $0x10] sm:$0xff] %vm284_vm0, %v673_v53  ;;  %v672_v56 = vmul.f32 %v659_v55, %v648_v54 }
 0x271   : > { %676 = vst.msk [vmem:[%s270_s28 + $0x8] sm:$0xff] %vm284_vm0, %v672_v56 }
 0x27e   : > { %v654_v58 = vpop.permute.xlu0 %653 }
 0x27f   : > { %v671_v59 = vmul.f32 %v654_v58, %v647_v57 }
 0x281   : > { %675 = vst.msk [vmem:[%s270_s28] sm:$0xff] %vm284_vm0, %v671_v59 }
 0x2af   : > { %v669_v61 = vpop.permute.xlu2 %668 }
 0x2b0   : > { %v674_v62 = vmul.f32 %v669_v61, %v650_v60 }
 0x2b2   : > { %678 = vst.msk [vmem:[%s270_s28 + $0x18] sm:$0xff] %vm284_vm0, %v674_v62 }
 0x2b3 PF: > { %s13_s14 = sadd.s32 1, %s908_s14   ;;  %s1042_s12 = smov %s904_s13 }
 0x2b4   : > { %p10_p5 = scmp.ge.s32.totalorder %s13_s14, 4   ;;  %s1043_s13 = smov %s1045_s15 }
 0x2b6   :  { %12 = sbr.rel (!%p10_p5) target bundleno = 2 (0x2), region = 76 }

// kernel: attention_forward.5
= control target key start
LH: loop header
LB: loop body
LE: loop exit
PB: predicated region body
PF: predicated region fallthrough
CT: control target
= control target key end

     0   :  { %s163_s0 = inlined_call_operand.vmem [shape: f32[16,64], index: 0, kind: input, shape index: {}]   ;;  %s164_s1 = inlined_call_operand.vmem [shape: f32[64,32], index: 1, kind: input, shape index: {}]   ;;  %s165_s2 = inlined_call_operand.hbm [shape: f32[16,32], index: 2, kind: output, shape index: {}]  }
   0x1   :  { %v21_v0 = vld [vmem:[%s164_s1 + $0x38] sm:$0xff]  ;;  %v20_v1 = vld [vmem:[%s164_s1 + $0x30] sm:$0xff]  ;;  %v19_v2 = vld [vmem:[%s164_s1 + $0x28] sm:$0xff] }
   0x2   :  { %37 = vmatpush.msra.mxu0 %v21_v0  ;;  %75 = vmatpush.msra.mxu1 %v21_v0 }
   0x4   :  { %38 = vmatpush.msra.mxu0 %v20_v1  ;;  %76 = vmatpush.msra.mxu1 %v20_v1 }
   0x5   :  { %7 = vsyncpa [#allocation3], 0  ;;  %v18_v3 = vld [vmem:[%s164_s1 + $0x20] sm:$0xff]  ;;  %v17_v4 = vld [vmem:[%s164_s1 + $0x18] sm:$0xff]  ;;  %vm22_vm0 = vcmask 523264   ;;  %s112_s29 = smov [#allocation2]  }
   0x6   :  { %39 = vmatpush.msra.mxu0 %v19_v2  ;;  %77 = vmatpush.msra.mxu1 %v19_v2  ;;  %v16_v5 = vld [vmem:[%s164_s1 + $0x10] sm:$0xff]  ;;  %v15_v6 = vld [vmem:[%s164_s1 + $0x8] sm:$0xff]  ;;  %v14_v7 = vld [vmem:[%s164_s1] sm:$0xff]  ;;  %s59_s30 = sshll.u32 %s112_s29, 4  ;;  %s61_s1 = sshll.u32 %s165_s2, 4  ;;  %vm52_vm1 = vcmask 261120   ;;  %s60_s30 = int_to_ptr.vmem [resolvable:$true] %s59_s30  ;;  %s62_s1 = int_to_ptr.hbm [resolvable:$true] %s61_s1 }
   0x7   :  { %v12_v8 = vld [vmem:[%s163_s0] sm:$0xff]  ;;  %v13_v9 = vld [vmem:[%s163_s0 + $0x8] sm:$0xff]  ;;  %s113_s5 = smov 128   ;;  %s114_s6 = smov 8  }
   0x8   :  { %40 = vmatpush.msra.mxu0 %v18_v3  ;;  %78 = vmatpush.msra.mxu1 %v18_v3 }
   0xa   :  { %41 = vmatpush.msra.mxu0 %v17_v4  ;;  %79 = vmatpush.msra.mxu1 %v17_v4 }
   0xc   :  { %42 = vmatpush.msra.mxu0 %v16_v5  ;;  %80 = vmatpush.msra.mxu1 %v16_v5 }
   0xe   :  { %43 = vmatpush.msra.mxu0 %v15_v6  ;;  %81 = vmatpush.msra.mxu1 %v15_v6 }
  0x10   :  { %44 = vmatpush.msra.mxu0 %v14_v7  ;;  %82 = vmatpush.msra.mxu1 %v14_v7 }
  0x11   :  { %73 = vmatmul.msk.f32.vlgmr.msra.gmra.mxu0 %vm22_vm0, %v12_v8  ;;  %74 = vmatmul.msk.f32.vlgmr.msra.gmra.mxu1 %vm22_vm0, %v13_v9 }
  0x8e   :  { %v46_v10 = vpop.f32.mrf.mxu0  ;;  %v49_v11 = vpop.f32.mrf.mxu1 }
  0x8f   :  { %53 = vst.msk [vmem:[#allocation2] sm:$0xff] %vm52_vm1, %v46_v10 }
  0x90   :  { %54 = vst.msk [vmem:[#allocation2 + $0x8] sm:$0xff] %vm52_vm1, %v49_v11 }
  0x91   :  { %67 = dma.vmem_to_hbm [thread:$0]  %s60_s30, 256, %s62_s1, [#allocation3], %s113_s5, %s113_s5, %s114_s6  }
  0x92   :  { %110 = dma.done.wait [#allocation3], 256  }
  0x93   :  { %111 = vsyncadd [#allocation3], 4294967040 }
  0x94   :  { %72 = vsyncpa [#allocation3], 1 }

</bundles_post_ra>
